<compile_context>
chip_gen: v7x
topology: tpu7x:2x2x1
jax: 0.10.0
libtpu: 0.0.40
codegen_flags: <defaults>
</compile_context>

<pallas_src>
import functools

import jax
import jax.numpy as jnp
from jax.experimental import pallas as pl
from jax.experimental.pallas import tpu as pltpu


def _round_up(x: int, m: int) -> int:
    return ((x + m - 1) // m) * m


def prepare_bigram_table(table):
    """Pad the (V, V) embedding table to lane-dense (V_PAD, V_PAD) f32 and
    stash the per-row logsumexp in column V.  Call once per weight update."""
    V = table.shape[0]
    V_PAD = _round_up(V + 1, 128)          # +1 guarantees a free LSE column
    table_f32 = table.astype(jnp.float32)
    row_lse = jax.nn.logsumexp(table_f32, axis=-1)          # (V,)
    table_pad = jnp.zeros((V_PAD, V_PAD), jnp.float32)
    table_pad = table_pad.at[:V, :V].set(table_f32)
    table_pad = table_pad.at[:V, V].set(row_lse)
    return table_pad


def _bigram_logits_kernel(idx_ref, table_ref, logits_ref):
    """Embedding gather as one-hot @ table (MXU). No loss computation."""
    v_pad = table_ref.shape[1]
    idx = idx_ref[...]                                            # (tn, 1) i32
    col = jax.lax.broadcasted_iota(jnp.int32, (1, v_pad), 1)      # (1, V_PAD)
    onehot = (col == idx).astype(jnp.float32)                     # (tn, V_PAD)
    logits_ref[...] = jnp.dot(
        onehot, table_ref[...],
        preferred_element_type=jnp.float32).astype(logits_ref.dtype)


def _bigram_loss_kernel(idx_ref, tgt_ref, table_ref, logits_ref, rowloss_ref,
                        *, vocab):
    """Gather + cross-entropy contributions. No cross-step state -> parallel."""
    v_pad = table_ref.shape[1]
    idx = idx_ref[...]                                            # (tn, 1) i32
    tgt = tgt_ref[...]                                            # (tn, 1) i32
    col = jax.lax.broadcasted_iota(jnp.int32, (1, v_pad), 1)      # (1, V_PAD)

    # Embedding lookup as one-hot matmul.  Column `vocab` of the padded table
    # carries the precomputed per-row logsumexp, so it comes out of the same
    # matmul for free.
    onehot = (col == idx).astype(jnp.float32)
    logits = jnp.dot(onehot, table_ref[...],
                     preferred_element_type=jnp.float32)          # (tn, V_PAD)
    logits_ref[...] = logits.astype(logits_ref.dtype)

    lse = jnp.sum(jnp.where(col == vocab, logits, 0.0),
                  axis=-1, keepdims=True)                         # (tn, 1)
    tgt_logit = jnp.sum(jnp.where(col == tgt, logits, 0.0),
                        axis=-1, keepdims=True)                   # (tn, 1)
    valid = (tgt >= 0).astype(jnp.float32)                        # (tn, 1)
    rowloss_ref[...] = valid * (lse - tgt_logit)


def bigram_forward(idx, table_pad, vocab, targets=None, *, tile_n=2048,
                   unpad=True, logits_dtype=jnp.float32):
    """Pallas-backed equivalent of BigramLanguageModel.forward.

    idx:       (B, T) int token ids.
    table_pad: output of prepare_bigram_table().
    vocab:     true vocab size V.
    unpad:     True  -> exact PyTorch shapes ((B,T,V) or (B*T,V));
               False -> return padded (N_PAD, V_PAD) logits (no extra HBM copy;
                        column `vocab` holds the row LSE, not a logit).
    """
    B, T = idx.shape
    V = vocab
    N = B * T
    V_PAD = table_pad.shape[1]

    tn = _round_up(min(tile_n, _round_up(N, 8)), 8)   # row tile (multiple of 8)
    N_PAD = _round_up(N, tn)
    grid = (N_PAD // tn,)

    idx_flat = idx.reshape(-1).astype(jnp.int32)
    idx_pad = jnp.pad(idx_flat, (0, N_PAD - N)).reshape(N_PAD, 1)

    idx_spec = pl.BlockSpec((tn, 1), lambda i: (i, 0))
    table_spec = pl.BlockSpec((V_PAD, V_PAD), lambda i: (0, 0))
    logits_spec = pl.BlockSpec((tn, V_PAD), lambda i: (i, 0))
    rowloss_spec = pl.BlockSpec((tn, 1), lambda i: (i, 0))

    if targets is None:
        # Generation path: no cross-entropy work, row axis fully parallel.
        logits_pad = pl.pallas_call(
            _bigram_logits_kernel,
            grid=grid,
            out_shape=jax.ShapeDtypeStruct((N_PAD, V_PAD), logits_dtype),
            in_specs=[idx_spec, table_spec],
            out_specs=logits_spec,
            compiler_params=pltpu.CompilerParams(
                dimension_semantics=("parallel",)),
        )(idx_pad, table_pad)
        if unpad:
            return logits_pad[:N, :V].reshape(B, T, V), None
        return logits_pad, None

    tgt_flat = targets.reshape(-1).astype(jnp.int32)
    tgt_pad = jnp.pad(tgt_flat, (0, N_PAD - N),
                      constant_values=-1).reshape(N_PAD, 1)

    kernel = functools.partial(_bigram_loss_kernel, vocab=V)
    logits_pad, row_loss = pl.pallas_call(
        kernel,
        grid=grid,
        out_shape=(
            jax.ShapeDtypeStruct((N_PAD, V_PAD), logits_dtype),
            jax.ShapeDtypeStruct((N_PAD, 1), jnp.float32),
        ),
        in_specs=[idx_spec, idx_spec, table_spec],
        out_specs=(logits_spec, rowloss_spec),
        compiler_params=pltpu.CompilerParams(
            dimension_semantics=("parallel",)),
    )(idx_pad, tgt_pad, table_pad)

    # Padded rows were masked to 0 in-kernel, so the mean over the TRUE B*T
    # rows is just sum / N.
    loss = jnp.sum(row_loss) * jnp.float32(1.0 / N)

    if unpad:
        # PyTorch returns logits.view(B*T, C) when targets are provided.
        return logits_pad[:N, :V], loss
    return logits_pad, loss


if __name__ == "__main__":
    key = jax.random.PRNGKey(0)
    k_table, k_idx, k_tgt = jax.random.split(key, 3)

    vocab_size = 65   # e.g. tiny-shakespeare char vocab
    B, T = 2, 8

    # nn.Embedding default init: N(0, 1)
    table = jax.random.normal(k_table, (vocab_size, vocab_size), jnp.float32)
    idx = jax.random.randint(k_idx, (B, T), 0, vocab_size, jnp.int32)
    targets = jax.random.randint(k_tgt, (B, T), 0, vocab_size, jnp.int32)

    # Pad the table (and precompute its per-row LSE) once, outside the hot path.
    table_pad = prepare_bigram_table(table)

    # Training path (with targets) and generation path (targets=None).
    logits, loss = bigram_forward(idx, table_pad, vocab_size, targets)
    logits_gen, loss_gen = bigram_forward(idx, table_pad, vocab_size, None)
    jax.block_until_ready((logits, loss, logits_gen))

    # Sanity check vs a pure-JAX reference of the PyTorch semantics.
    ref_logits = table[idx]                                   # (B, T, V)
    flat = ref_logits.reshape(B * T, vocab_size)
    ref_loss = jnp.mean(
        jax.nn.logsumexp(flat, axis=-1)
        - jnp.take_along_axis(flat, targets.reshape(-1, 1), axis=-1)[:, 0]
    )

    assert logits.shape == (B * T, vocab_size)
    assert logits_gen.shape == (B, T, vocab_size)
    assert loss_gen is None
    assert jnp.allclose(logits, flat, atol=1e-5)
    assert jnp.allclose(logits_gen, ref_logits, atol=1e-5)
    assert jnp.allclose(loss, ref_loss, atol=1e-5)

    print("KERNEL_OK")
</pallas_src>

<mosaic_0001>
module attributes {stable_mosaic.version = 11 : i64} {
  func.func @_bigram_loss_kernel(%arg0: i32, %arg1: memref<16x1xi32, #tpu.memory_space<vmem>>, %arg2: memref<16x1xi32, #tpu.memory_space<vmem>>, %arg3: memref<128x128xf32, #tpu.memory_space<vmem>>, %arg4: memref<16x128xf32, #tpu.memory_space<vmem>>, %arg5: memref<16x1xf32, #tpu.memory_space<vmem>>) attributes {dimension_semantics = [#tpu.dimension_semantics<parallel>], iteration_bounds = array<i64: 1>, scalar_prefetch = 0 : i64, scratch_operands = 0 : i64, tpu.core_type = #tpu.core_type<tc>, window_params = [{transform_indices = @transform_0, window_bounds = array<i64: 16, 1>}, {transform_indices = @transform_1, window_bounds = array<i64: 16, 1>}, {pipeline_mode = #tpu.pipeline_mode<synchronous>, transform_indices = @transform_2, window_bounds = array<i64: 128, 128>}, {transform_indices = @transform_3, window_bounds = array<i64: 16, 128>}, {transform_indices = @transform_4, window_bounds = array<i64: 16, 1>}]} {
    %c0 = arith.constant 0 : index
    %c0_0 = arith.constant 0 : index
    %0 = vector.load %arg1[%c0, %c0_0] : memref<16x1xi32, #tpu.memory_space<vmem>>, vector<16x1xi32>
    %c0_1 = arith.constant 0 : index
    %c0_2 = arith.constant 0 : index
    %1 = vector.load %arg2[%c0_1, %c0_2] : memref<16x1xi32, #tpu.memory_space<vmem>>, vector<16x1xi32>
    %2 = tpu.iota {dimensions = array<i32: 1>} : vector<1x128xi32>
    %3 = vector.broadcast %2 : vector<1x128xi32> to vector<16x128xi32>
    %4 = vector.broadcast %0 : vector<16x1xi32> to vector<16x128xi32>
    %5 = arith.cmpi eq, %3, %4 : vector<16x128xi32>
    %6 = arith.extui %5 : vector<16x128xi1> to vector<16x128xi32>
    %7 = arith.sitofp %6 : vector<16x128xi32> to vector<16x128xf32>
    %c0_3 = arith.constant 0 : index
    %c0_4 = arith.constant 0 : index
    %8 = vector.load %arg3[%c0_3, %c0_4] : memref<128x128xf32, #tpu.memory_space<vmem>>, vector<128x128xf32>
    %cst = arith.constant dense<0.000000e+00> : vector<16x128xf32>
    %9 = tpu.matmul %7, %8, %cst {dimension_numbers = #tpu.dot_dimension_numbers<[1], [0], [0], [1], [0, 0, 1, 1], [], []>} : vector<16x128xf32>, vector<128x128xf32>, vector<16x128xf32> -> vector<16x128xf32>
    %c0_5 = arith.constant 0 : index
    %c0_6 = arith.constant 0 : index
    %10 = vector.load %arg4[%c0_5, %c0_6] : memref<16x128xf32, #tpu.memory_space<vmem>>, vector<16x128xf32>
    tpu.vector_store %arg4[%c0_5, %c0_6], %9 {strides = array<i32>} : memref<16x128xf32, #tpu.memory_space<vmem>>, vector<16x128xf32>,
    %c65_i32 = arith.constant 65 : i32
    %11 = vector.broadcast %c65_i32 : i32 to vector<1x128xi32>
    %12 = arith.cmpi eq, %2, %11 : vector<1x128xi32>
    %cst_7 = arith.constant 0.000000e+00 : f32
    %13 = vector.shape_cast %12 : vector<1x128xi1> to vector<1x128xi1>
    %14 = vector.broadcast %13 : vector<1x128xi1> to vector<16x128xi1>
    %15 = vector.broadcast %cst_7 : f32 to vector<16x128xf32>
    %16 = arith.select %14, %9, %15 : vector<16x128xi1>, vector<16x128xf32>
    %cst_8 = arith.constant dense<0.000000e+00> : vector<16xf32>
    %17 = vector.multi_reduction <add>, %16, %cst_8 [1] : vector<16x128xf32> to vector<16xf32>
    %18 = vector.shape_cast %17 : vector<16xf32> to vector<16x1xf32>
    %19 = vector.broadcast %2 : vector<1x128xi32> to vector<16x128xi32>
    %20 = vector.broadcast %1 : vector<16x1xi32> to vector<16x128xi32>
    %21 = arith.cmpi eq, %19, %20 : vector<16x128xi32>
    %cst_9 = arith.constant 0.000000e+00 : f32
    %22 = vector.broadcast %cst_9 : f32 to vector<16x128xf32>
    %23 = arith.select %21, %9, %22 : vector<16x128xi1>, vector<16x128xf32>
    %cst_10 = arith.constant dense<0.000000e+00> : vector<16xf32>
    %24 = vector.multi_reduction <add>, %23, %cst_10 [1] : vector<16x128xf32> to vector<16xf32>
    %25 = vector.shape_cast %24 : vector<16xf32> to vector<16x1xf32>
    %c0_i32 = arith.constant 0 : i32
    %26 = vector.broadcast %c0_i32 : i32 to vector<16x1xi32>
    %27 = arith.cmpi sge, %1, %26 : vector<16x1xi32>
    %28 = arith.extui %27 : vector<16x1xi1> to vector<16x1xi32>
    %29 = arith.sitofp %28 : vector<16x1xi32> to vector<16x1xf32>
    %30 = arith.subf %18, %25 : vector<16x1xf32>
    %31 = arith.mulf %29, %30 : vector<16x1xf32>
    %c0_11 = arith.constant 0 : index
    %c0_12 = arith.constant 0 : index
    %32 = vector.load %arg5[%c0_11, %c0_12] : memref<16x1xf32, #tpu.memory_space<vmem>>, vector<16x1xf32>
    tpu.vector_store %arg5[%c0_11, %c0_12], %31 {strides = array<i32>} : memref<16x1xf32, #tpu.memory_space<vmem>>, vector<16x1xf32>,
    return
  }
  func.func @transform_0(%arg0: i32) -> (i32, i32) {
    %c0_i32 = arith.constant 0 : i32
    %c0_i32_0 = arith.constant 0 : i32
    return %arg0, %c0_i32 : i32, i32
  }
  func.func @transform_1(%arg0: i32) -> (i32, i32) {
    %c0_i32 = arith.constant 0 : i32
    %c0_i32_0 = arith.constant 0 : i32
    return %arg0, %c0_i32 : i32, i32
  }
  func.func @transform_2(%arg0: i32) -> (i32, i32) {
    %c0_i32 = arith.constant 0 : i32
    %c0_i32_0 = arith.constant 0 : i32
    %c0_i32_1 = arith.constant 0 : i32
    return %c0_i32, %c0_i32_0 : i32, i32
  }
  func.func @transform_3(%arg0: i32) -> (i32, i32) {
    %c0_i32 = arith.constant 0 : i32
    %c0_i32_0 = arith.constant 0 : i32
    return %arg0, %c0_i32 : i32, i32
  }
  func.func @transform_4(%arg0: i32) -> (i32, i32) {
    %c0_i32 = arith.constant 0 : i32
    %c0_i32_0 = arith.constant 0 : i32
    return %arg0, %c0_i32 : i32, i32
  }
}

</mosaic_0001>

<bundles_post_ra>
// kernel: tpu_custom_call.1
= control target key start
LH: loop header
LB: loop body
LE: loop exit
PB: predicated region body
PF: predicated region fallthrough
CT: control target
= control target key end

     0   :  { %10 = vsyncpa [#allocation3], 0  ;;  %s435_s0 = inlined_call_operand.vmem [shape: s32[16,1], index: 0, kind: input, shape index: {}]   ;;  %s436_s1 = inlined_call_operand.vmem [shape: s32[16,1], index: 1, kind: input, shape index: {}]   ;;  %s437_s2 = inlined_call_operand.hbm [shape: f32[128,128], index: 2, kind: input, shape index: {}]   ;;  %s438_s3 = inlined_call_operand.hbm [shape: f32[16,128], index: 3, kind: output, shape index: {0}]   ;;  %s439_s4 = inlined_call_operand.vmem [shape: f32[16,1], index: 4, kind: output, shape index: {1}]  }
   0x1   :  { %11 = vsyncpa [#allocation4], 0  ;;  %s347_s15 = smov [#allocation2]   ;;  %s299_s19 = scalar_lea.hbm %s437_s2, 2048 }
   0x2   :  { %s21_s16 = sshll.u32 %s347_s15, 4  ;;  %p300_p0 = scmp.ne.s32.totalorder %s437_s2, %s299_s19  ;;  %s22_s16 = int_to_ptr.vmem [resolvable:$true] %s21_s16 }
   0x3   :  { %p303_p1 = scmp.lt.u32.totalorder %s299_s19, %s437_s2 }
   0x5   :  { %p305_p2 = pnand %p303_p1, %p300_p0 }
   0x7   :  { %308 = shalt.err (!%p305_p2)
}
   0x8   :  { %s309_s24 = scalar_lea.vmem %s22_s16, 2048  ;;  %p314_p4 = scmp.lt.s32.totalorder %s22_s16, %s22_s16 }
   0x9   :  { %p310_p3 = scmp.ne.s32.totalorder %s22_s16, %s309_s24  ;;  %p315_p5 = scmp.lt.s32.totalorder %s309_s24, %s309_s24 }
   0xb   :  { %p316_p6 = por %p315_p5, %p314_p4 }
   0xd   :  { %p317_p7 = pnand %p316_p6, %p310_p3 }
   0xf   :  { %320 = shalt.err (!%p317_p7)
}
  0x10   :  { %s348_s25 = smov 128   ;;  %s349_s26 = smov 8  }
  0x11   :  { %27 = dma.hbm_to_vmem [thread:$0]  %s437_s2, 2048, %s22_s16, [#allocation3], %s348_s25, %s348_s25, %s349_s26  }
  0x12   :  { %343 = dma.done.wait [#allocation3], 2048  }
  0x13   :  { %344 = vsyncadd [#allocation3], 4294965248  ;;  %v350_v0 = vmov 0   ;;  %v31_v1 = vld [vmem:[%s435_s0] sm:$0xff]  ;;  %v50_v3 = vld [vmem:[#allocation2 + $0x8] sm:$0xff]  ;;  %v35_v29 = vlaneseq  ;;  %v351_v32 = vmov 1.0  }
  0x14   :  { %297 = vset.pattern.permute.xlu0 %v350_v0  ;;  %298 = vset.pattern.permute.xlu1 %v350_v0  ;;  %v49_v2 = vld [vmem:[#allocation2] sm:$0xff]  ;;  %v51_v4 = vld [vmem:[#allocation2 + $0x10] sm:$0xff]  ;;  %v52_v5 = vld [vmem:[#allocation2 + $0x18] sm:$0xff] }
  0x15   :  { %38 = vperm.xlu0 %297, %v31_v1   ;;  %v32_v6 = vld [vmem:[%s435_s0 + $0x8] sm:$0xff]  ;;  %v258_v7 = vpack.c.bf16 %v50_v3, %v49_v2  ;;  %v262_v8 = vpack.c.bf16 %v52_v5, %v51_v4  ;;  %v53_v9 = vld [vmem:[#allocation2 + $0x20] sm:$0xff]  ;;  %v55_v13 = vld [vmem:[#allocation2 + $0x30] sm:$0xff]  ;;  %v36_v30 = vand.u32 127, %v35_v29 }
  0x16   :  { %v54_v10 = vld [vmem:[#allocation2 + $0x28] sm:$0xff]  ;;  %v403_v12 = vld [vmem:[%s436_s1] sm:$0xff]  ;;  %v56_v14 = vld [vmem:[#allocation2 + $0x38] sm:$0xff] }
  0x17   :  { %259 = vmatprep.subr.bf16.mxu0 %v258_v7  ;;  %v266_v11 = vpack.c.bf16 %v54_v10, %v53_v9  ;;  %152 = vperm.xlu1 %298, %v403_v12   ;;  %v409_v15 = vld [vmem:[%s436_s1 + $0x8] sm:$0xff]  ;;  %v270_v16 = vpack.c.bf16 %v56_v14, %v55_v13  ;;  %v57_v17 = vld [vmem:[#allocation2 + $0x40] sm:$0xff]  ;;  %v59_v20 = vld [vmem:[#allocation2 + $0x50] sm:$0xff]  ;;  %vm142_vm2 = vcmp.eq.s32.totalorder %v36_v30, 65  ;;  %s352_s1 = smov [#allocation5]  }
  0x18   :  { %261 = vmatpush3.bf16.msra.mxu0 %v258_v7  ;;  %v58_v18 = vld [vmem:[#allocation2 + $0x48] sm:$0xff]  ;;  %v60_v21 = vld [vmem:[#allocation2 + $0x58] sm:$0xff]  ;;  %v61_v23 = vld [vmem:[#allocation2 + $0x60] sm:$0xff]  ;;  %s183_s9 = sshll.u32 %s352_s1, 4  ;;  %s184_s9 = int_to_ptr.vmem [resolvable:$true] %s183_s9 }
  0x19   :  { %41 = vperm.xlu0 %297, %v32_v6   ;;  %263 = vmatprep.subr.bf16.mxu0 %v262_v8  ;;  %v274_v19 = vpack.c.bf16 %v58_v18, %v57_v17  ;;  %v278_v22 = vpack.c.bf16 %v60_v21, %v59_v20  ;;  %v62_v24 = vld [vmem:[#allocation2 + $0x68] sm:$0xff]  ;;  %v63_v26 = vld [vmem:[#allocation2 + $0x70] sm:$0xff]  ;;  %v64_v27 = vld [vmem:[#allocation2 + $0x78] sm:$0xff]  ;;  %s321_s10 = scalar_lea.vmem %s184_s9, 256  ;;  %p326_p9 = scmp.lt.s32.totalorder %s184_s9, %s184_s9 }
  0x1a   :  { %v282_v25 = vpack.c.bf16 %v62_v24, %v61_v23  ;;  %v286_v28 = vpack.c.bf16 %v64_v27, %v63_v26  ;;  %p322_p8 = scmp.ne.s32.totalorder %s184_s9, %s321_s10  ;;  %p327_p10 = scmp.lt.s32.totalorder %s321_s10, %s321_s10 }
  0x1b   :  { %155 = vperm.xlu1 %298, %v409_v15  }
  0x1c   :  { %265 = vmatpush3.bf16.msra.mxu0 %v262_v8  ;;  %p328_p11 = por %p327_p10, %p326_p9 }
  0x1d   :  { %267 = vmatprep.subr.bf16.mxu0 %v266_v11 }
  0x1e   :  { %p329_p12 = pnand %p328_p11, %p322_p8 }
  0x20   :  { %269 = vmatpush3.bf16.msra.mxu0 %v266_v11 }
  0x21   :  { %271 = vmatprep.subr.bf16.mxu0 %v270_v16 }
  0x24   :  { %273 = vmatpush3.bf16.msra.mxu0 %v270_v16 }
  0x25   :  { %275 = vmatprep.subr.bf16.mxu0 %v274_v19 }
  0x28   :  { %277 = vmatpush3.bf16.msra.mxu0 %v274_v19 }
  0x29   :  { %279 = vmatprep.subr.bf16.mxu0 %v278_v22 }
  0x2c   :  { %281 = vmatpush3.bf16.msra.mxu0 %v278_v22 }
  0x2d   :  { %283 = vmatprep.subr.bf16.mxu0 %v282_v25 }
  0x30   :  { %285 = vmatpush3.bf16.msra.mxu0 %v282_v25 }
  0x31   :  { %287 = vmatprep.subr.bf16.mxu0 %v286_v28 }
  0x34   :  { %289 = vmatpush3.bf16.msra.mxu0 %v286_v28 }
  0x94   :  { %v39_v31 = vpop.permute.xlu0 %38 }
  0x95   :  { %vm43_vm0 = vcmp.eq.s32.totalorder %v36_v30, %v39_v31 }
  0x96   :  { %255 = vmatprep.mubr.msk.f32.mxu0 %vm43_vm0, %v351_v32  ;;  %v153_v34 = vpop.permute.xlu1 %152 }
  0x97   :  { %vm157_vm3 = vcmp.eq.s32.totalorder %v36_v30, %v153_v34 }
  0x98   :  { %v42_v33 = vpop.permute.xlu0 %41 }
  0x99   :  { %vm44_vm1 = vcmp.eq.s32.totalorder %v36_v30, %v42_v33 }
  0x9a   :  { %256 = vmatmul.mubr.msk.f32.vlgmr.msra.gmra.mrb[0].mxu0 %vm44_vm1, %v351_v32  ;;  %v156_v39 = vpop.permute.xlu1 %155 }
  0x9b   :  { %vm158_vm4 = vcmp.eq.s32.totalorder %v36_v30, %v156_v39 }
 0x16d   :  { %v257_v35 = vpop.f32.mrb[0].mxu0 }
 0x16e   :  { %141 = vst [vmem:[#allocation5 + $0x8] sm:$0xff] %v257_v35  ;;  %v131_v36 = vpop.f32.mrb[1].mxu0  ;;  %v146_v37 = vsel %vm142_vm2, %v257_v35, 0.0  ;;  %v160_v41 = vsel %vm158_vm4, %v257_v35, 0.0 }
 0x16f   :  { %140 = vst [vmem:[#allocation5] sm:$0xff] %v131_v36  ;;  %149 = vadd.xlane.f32.xlu1 %v146_v37  ;;  %v145_v38 = vsel %vm142_vm2, %v131_v36, 0.0  ;;  %v159_v40 = vsel %vm157_vm3, %v131_v36, 0.0 }
 0x170   :  { %147 = vadd.xlane.f32.xlu0 %v145_v38 }
 0x174   :  { %161 = vadd.xlane.f32.xlu0 %v159_v40 }
 0x178   :  { %163 = vadd.xlane.f32.xlu0 %v160_v41 }
 0x179   :  { %332 = shalt.err (!%p329_p12)
}
 0x17a   :  { %s333_s13 = scalar_lea.hbm %s438_s3, 256 }
 0x17b   :  { %p334_p13 = scmp.ne.s32.totalorder %s438_s3, %s333_s13  ;;  %p337_p0 = scmp.lt.u32.totalorder %s333_s13, %s438_s3 }
 0x17d   :  { %p339_p1 = pnand %p337_p0, %p334_p13 }
 0x17f   :  { %342 = shalt.err (!%p339_p1)
}
 0x180   :  { %189 = dma.vmem_to_hbm [thread:$0]  %s184_s9, 256, %s438_s3, [#allocation4], %s348_s25, %s348_s25, %s349_s26   ;;  %vm165_vm5 = vcmp.ge.s32.totalorder %v403_v12, 0  ;;  %v353_v43 = vmov 0.0   ;;  %vm166_vm6 = vcmp.ge.s32.totalorder %v409_v15, 0  ;;  %vm175_vm7 = vcmask 7168  }
 0x181   :  { %v203_v44 = vsel %vm165_vm5, 1.0, %v353_v43  ;;  %v204_v49 = vsel %vm166_vm6, 1.0, %v353_v43 }
 0x1fc   :  { %v150_v48 = vpop.xlane.xlu1 %149 }
 0x1fd   :  { %v148_v42 = vpop.xlane.xlu0 %147 }
 0x201   :  { %v162_v45 = vpop.xlane.xlu0 %161 }
 0x202   :  { %v171_v46 = vsub.f32 %v148_v42, %v162_v45 }
 0x204   :  { %v173_v47 = vmul.f32 %v203_v44, %v171_v46 }
 0x205   :  { %v164_v50 = vpop.xlane.xlu0 %163 }
 0x206   :  { %176 = vst.msk [vmem:[%s439_s4] sm:$0xff] %vm175_vm7, %v173_v47  ;;  %v172_v51 = vsub.f32 %v150_v48, %v164_v50 }
 0x208   :  { %v174_v52 = vmul.f32 %v204_v49, %v172_v51 }
 0x20a   :  { %177 = vst.msk [vmem:[%s439_s4 + $0x8] sm:$0xff] %vm175_vm7, %v174_v52 }
 0x20b   :  { %345 = dma.done.wait [#allocation4], 256  }
 0x20c   :  { %346 = vsyncadd [#allocation4], 4294967040 }
 0x20d   :  { %197 = vsyncpa [#allocation3], 1 }
 0x20e   :  { %198 = vsyncpa [#allocation4], 1 }

</bundles_post_ra>
